<compile_context>
chip_gen: v7x
topology: tpu7x:2x2x1
jax: 0.10.0
libtpu: 0.0.40
codegen_flags: <defaults>
</compile_context>

<pallas_src>
import jax
import jax.numpy as jnp
from jax.experimental import pallas as pl
from jax.experimental.pallas import tpu as pltpu


def _make_ssm_kernel(TT: int, N: int, LOG: int):
    """Kernel for one (batch row, time block) grid step.

    Refs:
      u_ref      : (TT, M)    input block for this batch row / time block
      a_pows_ref : (TT, N)    a^(k+1), k = 0..TT-1      (a = diag(A))
      a_scan_ref : (LOG, N)   a^(2^s), s = 0..LOG-1
      bt_ref     : (M, N)     B^T
      ct_ref     : (N, P)     C^T
      dt_ref     : (M, P)     D^T
      y_ref      : (TT, P)    output block
      x_ref      : (1, N)     carried state (VMEM scratch, persists over grid)
    """

    def kernel(u_ref, a_pows_ref, a_scan_ref, bt_ref, ct_ref, dt_ref,
               y_ref, x_ref):
        # New batch row -> reset the carried state (guard keys on the TIME axis).
        @pl.when(pl.program_id(1) == 0)
        def _():
            x_ref[...] = jnp.zeros_like(x_ref)

        u_blk = u_ref[...].astype(jnp.float32)                      # (TT, M)

        # Input projection: one MXU matmul per block.
        ub = jnp.dot(u_blk, bt_ref[...],
                     preferred_element_type=jnp.float32)            # (TT, N)

        # Log-depth inclusive scan over time (bulk VPU work + XLU rolls):
        #   h_k = sum_{j<=k} a^{k-j} * ub_j
        a_scan = a_scan_ref[...]                                     # (LOG, N)
        k_idx = jax.lax.broadcasted_iota(jnp.int32, (TT, N), 0)
        h = ub
        for s in range(LOG):
            d = 1 << s
            rolled = pltpu.roll(h, shift=d, axis=0)
            # jnp.where (not a 0/1 multiply) so that roll wrap-around rows —
            # which may hold OOB garbage (NaN/Inf) on a partial last block —
            # can never leak into valid rows.
            h = h + jnp.where(k_idx >= d, rolled, 0.0) * a_scan[s:s + 1, :]

        # x_k = a^(k+1) * x_in + h_k for every step of this block.
        x_all = a_pows_ref[...] * x_ref[...] + h                     # (TT, N)

        # Carry the state at the last step of this block to the next block.
        x_ref[...] = x_all[TT - 1:TT, :]

        # Output projection.
        # TODO(synk): could fuse [x_all | u] @ [[C^T],[D^T]] into one dot and/or
        # emit a lane-dense transposed y; both are minor at these tiny P/M/N.
        y = jnp.dot(x_all, ct_ref[...], preferred_element_type=jnp.float32)
        y = y + jnp.dot(u_blk, dt_ref[...], preferred_element_type=jnp.float32)
        y_ref[...] = y.astype(y_ref.dtype)

    return kernel


def random_ssm_forward(u, A, B, C, D, *, block_t: int = 128):
    """u: (batch, T, m_dim) -> (y_hat (batch, T, p_dim), None)."""
    bsz, T, M = u.shape
    N = A.shape[0]
    P = C.shape[0]

    # Time block: multiple of 8 (sublane tile), capped at block_t. No padding
    # of u / y is materialized; the last partial block is handled by masking.
    TT = max(8, min(block_t, ((T + 7) // 8) * 8))
    nt = pl.cdiv(T, TT)
    LOG = (TT - 1).bit_length()            # scan-doubling rounds, >= 3

    # Hoisted weight prep (no per-block casts inside the kernel).
    a_diag = jnp.diag(A).astype(jnp.float32)                           # (N,)
    a_pows = jnp.cumprod(jnp.broadcast_to(a_diag, (TT, N)), axis=0)    # a^(k+1)
    rows, p = [], a_diag
    for _ in range(LOG):
        rows.append(p)
        p = p * p
    a_scan = jnp.stack(rows, axis=0)                                   # (LOG, N)

    bt = B.T.astype(jnp.float32)                                       # (M, N)
    ct = C.T.astype(jnp.float32)                                       # (N, P)
    dt = D.T.astype(jnp.float32)                                       # (M, P)

    kernel = _make_ssm_kernel(TT, N, LOG)

    y = pl.pallas_call(
        kernel,
        out_shape=jax.ShapeDtypeStruct((bsz, T, P), u.dtype),
        grid_spec=pltpu.PrefetchScalarGridSpec(
            num_scalar_prefetch=0,
            # Batch rows are independent ("parallel" -> both v7x TensorCores);
            # the time axis carries the recurrence -> "arbitrary", innermost.
            grid=(bsz, nt),
            in_specs=[
                pl.BlockSpec((None, TT, M), lambda b, t: (b, t, 0)),   # u
                pl.BlockSpec((TT, N), lambda b, t: (0, 0)),            # a^(k+1)
                pl.BlockSpec((LOG, N), lambda b, t: (0, 0)),           # a^(2^s)
                pl.BlockSpec((M, N), lambda b, t: (0, 0)),             # B^T
                pl.BlockSpec((N, P), lambda b, t: (0, 0)),             # C^T
                pl.BlockSpec((M, P), lambda b, t: (0, 0)),             # D^T
            ],
            out_specs=pl.BlockSpec((None, TT, P), lambda b, t: (b, t, 0)),
            scratch_shapes=[pltpu.VMEM((1, N), jnp.float32)],          # x carry
        ),
        compiler_params=pltpu.CompilerParams(
            dimension_semantics=("parallel", "arbitrary"),
            vmem_limit_bytes=32 * 1024 * 1024),
    )(u, a_pows, a_scan, bt, ct, dt)

    return y, None


def _reference_forward(u, A, B, C, D):
    """Pure-JAX reference mirroring the PyTorch loop (for verification)."""
    a_diag = jnp.diag(A)

    def step(x, u_k):
        x = x * a_diag + u_k @ B.T
        y = x @ C.T + u_k @ D.T
        return x, y

    x0 = jnp.zeros((u.shape[0], A.shape[0]), dtype=u.dtype)
    _, ys = jax.lax.scan(step, x0, jnp.transpose(u, (1, 0, 2)))
    return jnp.transpose(ys, (1, 0, 2))


def _run_case(key, batch, T, n_dim, m_dim, p_dim):
    k_a, k_b, k_c, k_d, k_u = jax.random.split(key, 5)
    A = jax.random.normal(k_a, (n_dim, n_dim), dtype=jnp.float32) / jnp.sqrt(n_dim)
    B = jax.random.normal(k_b, (n_dim, m_dim), dtype=jnp.float32)
    C = jax.random.normal(k_c, (p_dim, n_dim), dtype=jnp.float32)
    D = jax.random.normal(k_d, (p_dim, m_dim), dtype=jnp.float32)
    u = jax.random.normal(k_u, (batch, T, m_dim), dtype=jnp.float32)

    y_hat, extra = random_ssm_forward(u, A, B, C, D)
    y_hat = jax.block_until_ready(y_hat)
    assert extra is None
    assert y_hat.shape == (batch, T, p_dim)

    y_ref = jax.block_until_ready(_reference_forward(u, A, B, C, D))
    assert jnp.allclose(y_hat, y_ref, atol=2e-3, rtol=2e-3), "mismatch vs reference"


if __name__ == "__main__":
    # Shapes consistent with the module's forward: u is (batch, T, m_dim).
    n_dim, m_dim, p_dim = 32, 4, 4
    key = jax.random.PRNGKey(0)
    k1, k2, k3 = jax.random.split(key, 3)

    # Multi-block case (carried state across time blocks, batch-parallel grid).
    _run_case(k1, batch=2, T=256, n_dim=n_dim, m_dim=m_dim, p_dim=p_dim)
    # Short sequence (single, non-128-wide time block).
    _run_case(k2, batch=3, T=40, n_dim=n_dim, m_dim=m_dim, p_dim=p_dim)
    # Partial last time block (exercises the OOB-masking / NaN-guard path).
    _run_case(k3, batch=2, T=200, n_dim=n_dim, m_dim=m_dim, p_dim=p_dim)

    print("KERNEL_OK")
</pallas_src>

<mosaic_0001>
module attributes {stable_mosaic.version = 11 : i64} {
  func.func @kernel(%arg0: i32, %arg1: i32, %arg2: memref<1x128x4xf32, #tpu.memory_space<vmem>>, %arg3: memref<128x32xf32, #tpu.memory_space<vmem>>, %arg4: memref<7x32xf32, #tpu.memory_space<vmem>>, %arg5: memref<4x32xf32, #tpu.memory_space<vmem>>, %arg6: memref<32x4xf32, #tpu.memory_space<vmem>>, %arg7: memref<4x4xf32, #tpu.memory_space<vmem>>, %arg8: memref<1x128x4xf32, #tpu.memory_space<vmem>>, %arg9: memref<1x32xf32, #tpu.memory_space<vmem>>) attributes {dimension_semantics = [#tpu.dimension_semantics<parallel>, #tpu.dimension_semantics<arbitrary>], iteration_bounds = array<i64: 2, 2>, scalar_prefetch = 0 : i64, scratch_operands = 1 : i64, tpu.core_type = #tpu.core_type<tc>, window_params = [{transform_indices = @transform_0, window_bounds = array<i64: 1, 128, 4>}, {pipeline_mode = #tpu.pipeline_mode<synchronous>, transform_indices = @transform_1, window_bounds = array<i64: 128, 32>}, {pipeline_mode = #tpu.pipeline_mode<synchronous>, transform_indices = @transform_2, window_bounds = array<i64: 7, 32>}, {pipeline_mode = #tpu.pipeline_mode<synchronous>, transform_indices = @transform_3, window_bounds = array<i64: 4, 32>}, {pipeline_mode = #tpu.pipeline_mode<synchronous>, transform_indices = @transform_4, window_bounds = array<i64: 32, 4>}, {pipeline_mode = #tpu.pipeline_mode<synchronous>, transform_indices = @transform_5, window_bounds = array<i64: 4, 4>}, {transform_indices = @transform_6, window_bounds = array<i64: 1, 128, 4>}]} {
    %c0_i32 = arith.constant 0 : i32
    %0 = arith.cmpi eq, %arg1, %c0_i32 : i32
    %1 = arith.extui %0 : i1 to i32
    %c0_i32_0 = arith.constant 0 : i32
    %2 = arith.cmpi ne, %1, %c0_i32_0 : i32
    scf.if %2 {
      %cst_36 = arith.constant 0.000000e+00 : f32
      %87 = vector.broadcast %cst_36 : f32 to vector<1x32xf32>
      %c0_37 = arith.constant 0 : index
      %c0_38 = arith.constant 0 : index
      %88 = vector.load %arg9[%c0_37, %c0_38] : memref<1x32xf32, #tpu.memory_space<vmem>>, vector<1x32xf32>
      tpu.vector_store %arg9[%c0_37, %c0_38], %87 {strides = array<i32>} : memref<1x32xf32, #tpu.memory_space<vmem>>, vector<1x32xf32>,
    } else {
    }
    %c0 = arith.constant 0 : index
    %c0_1 = arith.constant 0 : index
    %c0_2 = arith.constant 0 : index
    %3 = vector.load %arg2[%c0, %c0_1, %c0_2] : memref<1x128x4xf32, #tpu.memory_space<vmem>>, vector<1x128x4xf32>
    %4 = vector.shape_cast %3 : vector<1x128x4xf32> to vector<128x4xf32>
    %c0_3 = arith.constant 0 : index
    %c0_4 = arith.constant 0 : index
    %5 = vector.load %arg5[%c0_3, %c0_4] : memref<4x32xf32, #tpu.memory_space<vmem>>, vector<4x32xf32>
    %cst = arith.constant dense<0.000000e+00> : vector<128x32xf32>
    %6 = tpu.matmul %4, %5, %cst {dimension_numbers = #tpu.dot_dimension_numbers<[1], [0], [0], [1], [0, 0, 1, 1], [], []>} : vector<128x4xf32>, vector<4x32xf32>, vector<128x32xf32> -> vector<128x32xf32>
    %c0_5 = arith.constant 0 : index
    %c0_6 = arith.constant 0 : index
    %7 = vector.load %arg4[%c0_5, %c0_6] : memref<7x32xf32, #tpu.memory_space<vmem>>, vector<7x32xf32>
    %8 = tpu.iota {dimensions = array<i32: 0>} : vector<128x32xi32>
    %c1_i32 = arith.constant 1 : i32
    %9 = tpu.dynamic_rotate %6 by %c1_i32 dim 0 : vector<128x32xf32>, i32 -> vector<128x32xf32>
    %c1_i32_7 = arith.constant 1 : i32
    %10 = vector.broadcast %c1_i32_7 : i32 to vector<128x32xi32>
    %11 = arith.cmpi sge, %8, %10 : vector<128x32xi32>
    %cst_8 = arith.constant 0.000000e+00 : f32
    %12 = vector.broadcast %cst_8 : f32 to vector<128x32xf32>
    %13 = arith.select %11, %9, %12 : vector<128x32xi1>, vector<128x32xf32>
    %14 = vector.extract_strided_slice %7 {offsets = [0, 0], sizes = [1, 32], strides = [1, 1]} : vector<7x32xf32> to vector<1x32xf32>
    %15 = vector.broadcast %14 : vector<1x32xf32> to vector<128x32xf32>
    %16 = arith.mulf %13, %15 : vector<128x32xf32>
    %17 = arith.addf %6, %16 : vector<128x32xf32>
    %c2_i32 = arith.constant 2 : i32
    %18 = tpu.dynamic_rotate %17 by %c2_i32 dim 0 : vector<128x32xf32>, i32 -> vector<128x32xf32>
    %c2_i32_9 = arith.constant 2 : i32
    %19 = vector.broadcast %c2_i32_9 : i32 to vector<128x32xi32>
    %20 = arith.cmpi sge, %8, %19 : vector<128x32xi32>
    %cst_10 = arith.constant 0.000000e+00 : f32
    %21 = vector.broadcast %cst_10 : f32 to vector<128x32xf32>
    %22 = arith.select %20, %18, %21 : vector<128x32xi1>, vector<128x32xf32>
    %23 = vector.extract_strided_slice %7 {offsets = [1, 0], sizes = [1, 32], strides = [1, 1]} : vector<7x32xf32> to vector<1x32xf32>
    %24 = vector.broadcast %23 : vector<1x32xf32> to vector<128x32xf32>
    %25 = arith.mulf %22, %24 : vector<128x32xf32>
    %26 = arith.addf %17, %25 : vector<128x32xf32>
    %c4_i32 = arith.constant 4 : i32
    %27 = tpu.dynamic_rotate %26 by %c4_i32 dim 0 : vector<128x32xf32>, i32 -> vector<128x32xf32>
    %c4_i32_11 = arith.constant 4 : i32
    %28 = vector.broadcast %c4_i32_11 : i32 to vector<128x32xi32>
    %29 = arith.cmpi sge, %8, %28 : vector<128x32xi32>
    %cst_12 = arith.constant 0.000000e+00 : f32
    %30 = vector.broadcast %cst_12 : f32 to vector<128x32xf32>
    %31 = arith.select %29, %27, %30 : vector<128x32xi1>, vector<128x32xf32>
    %32 = vector.extract_strided_slice %7 {offsets = [2, 0], sizes = [1, 32], strides = [1, 1]} : vector<7x32xf32> to vector<1x32xf32>
    %33 = vector.broadcast %32 : vector<1x32xf32> to vector<128x32xf32>
    %34 = arith.mulf %31, %33 : vector<128x32xf32>
    %35 = arith.addf %26, %34 : vector<128x32xf32>
    %c8_i32 = arith.constant 8 : i32
    %36 = tpu.dynamic_rotate %35 by %c8_i32 dim 0 : vector<128x32xf32>, i32 -> vector<128x32xf32>
    %c8_i32_13 = arith.constant 8 : i32
    %37 = vector.broadcast %c8_i32_13 : i32 to vector<128x32xi32>
    %38 = arith.cmpi sge, %8, %37 : vector<128x32xi32>
    %cst_14 = arith.constant 0.000000e+00 : f32
    %39 = vector.broadcast %cst_14 : f32 to vector<128x32xf32>
    %40 = arith.select %38, %36, %39 : vector<128x32xi1>, vector<128x32xf32>
    %41 = vector.extract_strided_slice %7 {offsets = [3, 0], sizes = [1, 32], strides = [1, 1]} : vector<7x32xf32> to vector<1x32xf32>
    %42 = vector.broadcast %41 : vector<1x32xf32> to vector<128x32xf32>
    %43 = arith.mulf %40, %42 : vector<128x32xf32>
    %44 = arith.addf %35, %43 : vector<128x32xf32>
    %c16_i32 = arith.constant 16 : i32
    %45 = tpu.dynamic_rotate %44 by %c16_i32 dim 0 : vector<128x32xf32>, i32 -> vector<128x32xf32>
    %c16_i32_15 = arith.constant 16 : i32
    %46 = vector.broadcast %c16_i32_15 : i32 to vector<128x32xi32>
    %47 = arith.cmpi sge, %8, %46 : vector<128x32xi32>
    %cst_16 = arith.constant 0.000000e+00 : f32
    %48 = vector.broadcast %cst_16 : f32 to vector<128x32xf32>
    %49 = arith.select %47, %45, %48 : vector<128x32xi1>, vector<128x32xf32>
    %50 = vector.extract_strided_slice %7 {offsets = [4, 0], sizes = [1, 32], strides = [1, 1]} : vector<7x32xf32> to vector<1x32xf32>
    %51 = vector.broadcast %50 : vector<1x32xf32> to vector<128x32xf32>
    %52 = arith.mulf %49, %51 : vector<128x32xf32>
    %53 = arith.addf %44, %52 : vector<128x32xf32>
    %c32_i32 = arith.constant 32 : i32
    %54 = tpu.dynamic_rotate %53 by %c32_i32 dim 0 : vector<128x32xf32>, i32 -> vector<128x32xf32>
    %c32_i32_17 = arith.constant 32 : i32
    %55 = vector.broadcast %c32_i32_17 : i32 to vector<128x32xi32>
    %56 = arith.cmpi sge, %8, %55 : vector<128x32xi32>
    %cst_18 = arith.constant 0.000000e+00 : f32
    %57 = vector.broadcast %cst_18 : f32 to vector<128x32xf32>
    %58 = arith.select %56, %54, %57 : vector<128x32xi1>, vector<128x32xf32>
    %59 = vector.extract_strided_slice %7 {offsets = [5, 0], sizes = [1, 32], strides = [1, 1]} : vector<7x32xf32> to vector<1x32xf32>
    %60 = vector.broadcast %59 : vector<1x32xf32> to vector<128x32xf32>
    %61 = arith.mulf %58, %60 : vector<128x32xf32>
    %62 = arith.addf %53, %61 : vector<128x32xf32>
    %c64_i32 = arith.constant 64 : i32
    %63 = tpu.dynamic_rotate %62 by %c64_i32 dim 0 : vector<128x32xf32>, i32 -> vector<128x32xf32>
    %c64_i32_19 = arith.constant 64 : i32
    %64 = vector.broadcast %c64_i32_19 : i32 to vector<128x32xi32>
    %65 = arith.cmpi sge, %8, %64 : vector<128x32xi32>
    %cst_20 = arith.constant 0.000000e+00 : f32
    %66 = vector.broadcast %cst_20 : f32 to vector<128x32xf32>
    %67 = arith.select %65, %63, %66 : vector<128x32xi1>, vector<128x32xf32>
    %68 = vector.extract_strided_slice %7 {offsets = [6, 0], sizes = [1, 32], strides = [1, 1]} : vector<7x32xf32> to vector<1x32xf32>
    %69 = vector.broadcast %68 : vector<1x32xf32> to vector<128x32xf32>
    %70 = arith.mulf %67, %69 : vector<128x32xf32>
    %71 = arith.addf %62, %70 : vector<128x32xf32>
    %c0_21 = arith.constant 0 : index
    %c0_22 = arith.constant 0 : index
    %72 = vector.load %arg3[%c0_21, %c0_22] : memref<128x32xf32, #tpu.memory_space<vmem>>, vector<128x32xf32>
    %c0_23 = arith.constant 0 : index
    %c0_24 = arith.constant 0 : index
    %73 = vector.load %arg9[%c0_23, %c0_24] : memref<1x32xf32, #tpu.memory_space<vmem>>, vector<1x32xf32>
    %74 = vector.broadcast %73 : vector<1x32xf32> to vector<128x32xf32>
    %75 = arith.mulf %72, %74 : vector<128x32xf32>
    %76 = arith.addf %75, %71 : vector<128x32xf32>
    %77 = vector.extract_strided_slice %76 {offsets = [127, 0], sizes = [1, 32], strides = [1, 1]} : vector<128x32xf32> to vector<1x32xf32>
    %c0_25 = arith.constant 0 : index
    %c0_26 = arith.constant 0 : index
    %78 = vector.load %arg9[%c0_25, %c0_26] : memref<1x32xf32, #tpu.memory_space<vmem>>, vector<1x32xf32>
    tpu.vector_store %arg9[%c0_25, %c0_26], %77 {strides = array<i32>} : memref<1x32xf32, #tpu.memory_space<vmem>>, vector<1x32xf32>,
    %c0_27 = arith.constant 0 : index
    %c0_28 = arith.constant 0 : index
    %79 = vector.load %arg6[%c0_27, %c0_28] : memref<32x4xf32, #tpu.memory_space<vmem>>, vector<32x4xf32>
    %cst_29 = arith.constant dense<0.000000e+00> : vector<128x4xf32>
    %80 = tpu.matmul %76, %79, %cst_29 {dimension_numbers = #tpu.dot_dimension_numbers<[1], [0], [0], [1], [0, 0, 1, 1], [], []>} : vector<128x32xf32>, vector<32x4xf32>, vector<128x4xf32> -> vector<128x4xf32>
    %c0_30 = arith.constant 0 : index
    %c0_31 = arith.constant 0 : index
    %81 = vector.load %arg7[%c0_30, %c0_31] : memref<4x4xf32, #tpu.memory_space<vmem>>, vector<4x4xf32>
    %cst_32 = arith.constant dense<0.000000e+00> : vector<128x4xf32>
    %82 = tpu.matmul %4, %81, %cst_32 {dimension_numbers = #tpu.dot_dimension_numbers<[1], [0], [0], [1], [0, 0, 1, 1], [], []>} : vector<128x4xf32>, vector<4x4xf32>, vector<128x4xf32> -> vector<128x4xf32>
    %83 = arith.addf %80, %82 : vector<128x4xf32>
    %c0_33 = arith.constant 0 : index
    %c0_34 = arith.constant 0 : index
    %c0_35 = arith.constant 0 : index
    %84 = vector.load %arg8[%c0_33, %c0_34, %c0_35] : memref<1x128x4xf32, #tpu.memory_space<vmem>>, vector<1x128x4xf32>
    %85 = vector.shape_cast %84 : vector<1x128x4xf32> to vector<128x4xf32>
    %86 = vector.shape_cast %83 : vector<128x4xf32> to vector<1x128x4xf32>
    tpu.vector_store %arg8[%c0_33, %c0_34, %c0_35], %86 {strides = array<i32>} : memref<1x128x4xf32, #tpu.memory_space<vmem>>, vector<1x128x4xf32>,
    return
  }
  func.func @transform_0(%arg0: i32, %arg1: i32) -> (i32, i32, i32) {
    %c0_i32 = arith.constant 0 : i32
    %c0_i32_0 = arith.constant 0 : i32
    return %arg0, %arg1, %c0_i32 : i32, i32, i32
  }
  func.func @transform_1(%arg0: i32, %arg1: i32) -> (i32, i32) {
    %c0_i32 = arith.constant 0 : i32
    %c0_i32_0 = arith.constant 0 : i32
    %c0_i32_1 = arith.constant 0 : i32
    return %c0_i32, %c0_i32_0 : i32, i32
  }
  func.func @transform_2(%arg0: i32, %arg1: i32) -> (i32, i32) {
    %c0_i32 = arith.constant 0 : i32
    %c0_i32_0 = arith.constant 0 : i32
    %c0_i32_1 = arith.constant 0 : i32
    return %c0_i32, %c0_i32_0 : i32, i32
  }
  func.func @transform_3(%arg0: i32, %arg1: i32) -> (i32, i32) {
    %c0_i32 = arith.constant 0 : i32
    %c0_i32_0 = arith.constant 0 : i32
    %c0_i32_1 = arith.constant 0 : i32
    return %c0_i32, %c0_i32_0 : i32, i32
  }
  func.func @transform_4(%arg0: i32, %arg1: i32) -> (i32, i32) {
    %c0_i32 = arith.constant 0 : i32
    %c0_i32_0 = arith.constant 0 : i32
    %c0_i32_1 = arith.constant 0 : i32
    return %c0_i32, %c0_i32_0 : i32, i32
  }
  func.func @transform_5(%arg0: i32, %arg1: i32) -> (i32, i32) {
    %c0_i32 = arith.constant 0 : i32
    %c0_i32_0 = arith.constant 0 : i32
    %c0_i32_1 = arith.constant 0 : i32
    return %c0_i32, %c0_i32_0 : i32, i32
  }
  func.func @transform_6(%arg0: i32, %arg1: i32) -> (i32, i32, i32) {
    %c0_i32 = arith.constant 0 : i32
    %c0_i32_0 = arith.constant 0 : i32
    return %arg0, %arg1, %c0_i32 : i32, i32, i32
  }
}

</mosaic_0001>

<bundles_post_ra>
// kernel: tpu_custom_call.1
= control target key start
LH: loop header
LB: loop body
LE: loop exit
PB: predicated region body
PF: predicated region fallthrough
CT: control target
= control target key end

     0   :  { %s1961_s21 = smov 0   ;;  %s1963_s22 = smov 0   ;;  %s2580_s0 = inlined_call_operand.vmem [shape: f32[2,256,4], index: 0, kind: input, shape index: {}]   ;;  %s2581_s1 = inlined_call_operand.vmem [shape: f32[128,32], index: 1, kind: input, shape index: {}]   ;;  %s2582_s2 = inlined_call_operand.vmem [shape: f32[7,32], index: 2, kind: input, shape index: {}]   ;;  %s2583_s3 = inlined_call_operand.vmem [shape: f32[4,32], index: 3, kind: input, shape index: {}]   ;;  %s2584_s4 = inlined_call_operand.vmem [shape: f32[32,4], index: 4, kind: input, shape index: {}]   ;;  %s2585_s5 = inlined_call_operand.vmem [shape: f32[4,4], index: 5, kind: input, shape index: {}]   ;;  %s2586_s6 = inlined_call_operand.vmem [shape: f32[2,256,4], index: 6, kind: output, shape index: {}]  }
   0x1   :  { %s1965_s23 = smov 0   ;;  %s1967_s24 = smov 0  }
   0x2   :  { %s1969_s25 = smov 0  }
   0x3 LB: > { %s25_s26 = sadd.s32 1, %s1915_s23  ;;  %s28_s27 = sadd.s32 1, %s1919_s24  ;;  %s1923_s25 = sphi %s1969_s25, %s16_s25   ;;  %s1919_s24 = sphi %s1967_s24, %s2590_s24   ;;  %s1915_s23 = sphi %s1965_s23, %s2589_s23   ;;  %s1911_s22 = sphi %s1963_s22, %s2588_s22   ;;  %s1907_s21 = sphi %s1961_s21, %s2587_s21  }
   0x4   : > { %p26_p0 = scmp.ge.s32.totalorder %s25_s26, 2  ;;  %p1619_p1 = scmp.ge.s32.totalorder %s1923_s25, 1 }
   0x5   : > { %p233_p2 = scmp.lt.s32.totalorder %s1923_s25, 5 }
   0x6   : > { %s2592_s26 = smov (%p26_p0, %s25_s26), 0  ;;  %s2594_s27 = smov (!%p26_p0, %s28_s27), %s1919_s24 }
   0x7   : > { %p234_p3 = pnand %p1619_p1, %p233_p2  ;;  %p30_p4 = scmp.ge.s32.totalorder %s2594_s27, 2 }
   0x8   : > { %s1620_s28 = sshll.u32 (!%p234_p3), %s1907_s21, 4  ;;  %p272_p5 = scmp.lt.s32.totalorder (!%p234_p3), %s1911_s22, 1 }
   0x9   : > { %s2596_s27 = smov (%p30_p4, %s2594_s27), 0  ;;  %237 = sbr.rel (%p234_p3) target bundleno = 567 (0x237), region = 44 }
   0xa   : > { %p274_p6 = scmp.lt.s32.totalorder (!%p234_p3), %s1620_s28, 31  ;;  %p1626_p7 = scmp.ne.s32.totalorder (!%p234_p3), %s1907_s21, 0 }
  0x10   : > { %s2598_s22 = smov (!%p272_p5, %s1911_s22), 1  ;;  %s2600_s28 = smov (!%p274_p6, %s1620_s28), 31 }
  0x11   : > { %s1621_s29 = sshll.u32 %s2598_s22, 5  ;;  %294 = sbr.rel (%p1626_p7) target bundleno = 24 (0x18), region = 48  ;;  %vm295_vm0 = vcmask (!%p1626_p7), 253952   ;;  %v1925_v0 = vmov (!%p1626_p7), 0.0  }
  0x12   : > { %s277_s30 = sadd.s32 %s1621_s29, %s2600_s28  ;;  %296 = vst.msk [vmem:[#allocation2] sm:$0x1] (!%p1626_p7), %vm295_vm0, %v1925_v0 }
  0x13   : > { %s1622_s7 = sshll.u32 %s277_s30, 3 }
  0x14   : > { %s1994_s10 = scalar_lea.vmem %s2580_s0, %s1622_s7  ;;  %s1999_s13 = scalar_lea.vmem %s2586_s6, %s1622_s7 }
  0x18 PF: > { %v313_v1 = vld [vmem:[%s2583_s3] sm:$0xf]  ;;  %vm363_vm1 = vcmask 1043456   ;;  %vm314_vm2 = vcmask 31744   ;;  %v298_v3 = vld [vmem:[%s1994_s10 + $0x8] sm:$0xff]  ;;  %v299_v4 = vld [vmem:[%s1994_s10 + $0x10] sm:$0xff]  ;;  %v513_v25 = vlaneseq }
  0x19   : > { %v297_v2 = vld [vmem:[%s1994_s10] sm:$0xff]  ;;  %1734 = vmatprep.subr.msk.mxu0 %vm363_vm1, %v313_v1  ;;  %v300_v6 = vld [vmem:[%s1994_s10 + $0x18] sm:$0xff]  ;;  %v302_v8 = vld [vmem:[%s1994_s10 + $0x28] sm:$0xff]  ;;  %vm1315_vm9 = vcmask 261120   ;;  %vm1160_vm10 = vcmask 261127  }
  0x1a   : > { %1736 = vmatprep.mubr.msk.f32.mxu0 %vm314_vm2, %v297_v2  ;;  %1735 = vmatpush3.msk.msra.mxu0 %vm363_vm1, %v313_v1  ;;  %v305_v5 = vld [vmem:[%s1994_s10 + $0x40] sm:$0xff]  ;;  %v303_v9 = vld [vmem:[%s1994_s10 + $0x30] sm:$0xff]  ;;  %v304_v10 = vld [vmem:[%s1994_s10 + $0x38] sm:$0xff]  ;;  %v2073_v26 = vshrl.u32 %v513_v25, 7 }
  0x1b   : > { %1737 = vmatmul.mubr.msk.f32.vlgmr.msra.gmra.mrb[0].mxu0 %vm314_vm2, %v298_v3  ;;  %1774 = vmatprep.mubr.msk.f32.mxu1 %vm314_vm2, %v305_v5  ;;  %v301_v7 = vld [vmem:[%s1994_s10 + $0x20] sm:$0xff]  ;;  %v306_v11 = vld [vmem:[%s1994_s10 + $0x48] sm:$0xff]  ;;  %v307_v12 = vld [vmem:[%s1994_s10 + $0x50] sm:$0xff] }
  0x1c   : > { %1739 = vmatprep.mubr.msk.f32.mxu0 %vm314_vm2, %v299_v4  ;;  %v308_v13 = vld [vmem:[%s1994_s10 + $0x58] sm:$0xff]  ;;  %v309_v14 = vld [vmem:[%s1994_s10 + $0x60] sm:$0xff]  ;;  %v310_v15 = vld [vmem:[%s1994_s10 + $0x68] sm:$0xff]  ;;  %v597_v27 = vsub.s32 0, %v2073_v26  ;;  %vm546_vm3 = vcmp.lt.s32.totalorder %v2073_v26, 1  ;;  %v698_v41 = vsub.s32 1, %v2073_v26 }
  0x1d   : > { %v311_v16 = vld [vmem:[%s1994_s10 + $0x70] sm:$0xff]  ;;  %v312_v17 = vld [vmem:[%s1994_s10 + $0x78] sm:$0xff]  ;;  %v1166_v18 = vld [vmem:[%s2585_s5] sm:$0xf]  ;;  %v799_v44 = vsub.s32 2, %v2073_v26  ;;  %vm647_vm4 = vcmp.lt.s32.totalorder %v2073_v26, 2 }
  0x1e   : > { %1760 = vmatprep.subr.msk.mxu0 %vm363_vm1, %v1166_v18  ;;  %1826 = vmatprep.subr.msk.mxu1 %vm363_vm1, %v1166_v18  ;;  %v1162_v19 = vld [vmem:[%s2584_s4] sm:$0xff]  ;;  %v1163_v20 = vld [vmem:[%s2584_s4 + $0x8] sm:$0xff]  ;;  %v1164_v21 = vld [vmem:[%s2584_s4 + $0x10] sm:$0xff]  ;;  %v867_v51 = vsub.s32 3, %v2073_v26  ;;  %v935_v52 = vsub.s32 4, %v2073_v26  ;;  %vm748_vm5 = vcmp.lt.s32.totalorder %v2073_v26, 4 }
  0x1f   : > { %1740 = vmatmul.mubr.msk.f32.gmra.mrb[2].mxu0 %vm314_vm2, %v300_v6  ;;  %1827 = vmatpush3.msk.msra.mxu1 %vm363_vm1, %v1166_v18  ;;  %v1818_v22 = vpack.c.bf16 %v1163_v20, %v1162_v19  ;;  %v1165_v23 = vld [vmem:[%s2584_s4 + $0x18] sm:$0xff]  ;;  %v2079_v28 = vld [vmem:[%s2582_s2] sm:$0x7f]  ;;  %vm563_vm6 = vcmp.ge.s32.totalorder %v2073_v26, 1  ;;  %vm664_vm7 = vcmp.ge.s32.totalorder %v2073_v26, 2  ;;  %vm765_vm8 = vcmp.ge.s32.totalorder %v2073_v26, 4 }
  0x20   : > { %1742 = vmatprep.mubr.msk.f32.mxu0 %vm314_vm2, %v301_v7  ;;  %1761 = vmatpush3.msk.msra.mxu0 %vm363_vm1, %v1166_v18  ;;  %v1822_v24 = vpack.c.bf16 %v1165_v23, %v1164_v21  ;;  %v2085_v32 = vrot.slane %v2079_v28, %v597_v27  ;;  %v2107_v55 = vrot.slane %v2079_v28, %v698_v41 }
  0x21   : > { %1775 = vmatmul.mubr.msk.f32.vlgmr.msra.gmra.mrb[0].mxu1 %vm314_vm2, %v306_v11  ;;  %1819 = vmatprep.subr.bf16.mxu1 %v1818_v22  ;;  %v2112_v57 = vrot.slane %v2079_v28, %v799_v44 }
  0x22   : > { %1777 = vmatprep.mubr.msk.f32.mxu1 %vm314_vm2, %v307_v12  ;;  %1821 = vmatpush3.bf16.msra.mxu1 %v1818_v22 }
  0x23   : > { %1743 = vmatmul.mubr.msk.f32.gmra.mrb[4].mxu0 %vm314_vm2, %v302_v8  ;;  %1823 = vmatprep.subr.bf16.mxu1 %v1822_v24 }
  0x24   : > { %1745 = vmatprep.mubr.msk.f32.mxu0 %vm314_vm2, %v303_v9 }
  0x25   : > { %1778 = vmatmul.mubr.msk.f32.gmra.mrb[2].mxu1 %vm314_vm2, %v308_v13 }
  0x26   : > { %1780 = vmatprep.mubr.msk.f32.mxu1 %vm314_vm2, %v309_v14  ;;  %1825 = vmatpush3.bf16.msra.mxu1 %v1822_v24 }
  0x27   : > { %1746 = vmatmul.mubr.msk.f32.gmra.mrb[6].mxu0 %vm314_vm2, %v304_v10 }
  0x28   : > { %1748 = vmatprep.mubr.msk.f32.mxu0 %vm314_vm2, %v305_v5 }
  0x29   : > { %1781 = vmatmul.mubr.msk.f32.gmra.mrb[4].mxu1 %vm314_vm2, %v310_v15 }
  0x2a   : > { %1783 = vmatprep.mubr.msk.f32.mxu1 %vm314_vm2, %v311_v16 }
  0x2b   : > { %1749 = vmatmul.mubr.msk.f32.gmra.mrb[8].mxu0 %vm314_vm2, %v306_v11 }
  0x2c   : > { %1751 = vmatprep.mubr.msk.f32.mxu0 %vm314_vm2, %v307_v12 }
  0x2d   : > { %1784 = vmatmul.mubr.msk.f32.gmra.mrb[6].mxu1 %vm314_vm2, %v312_v17 }
  0x2f   : > { %1752 = vmatmul.mubr.msk.f32.gmra.mrb[10].mxu0 %vm314_vm2, %v308_v13 }
  0x30   : > { %1754 = vmatprep.mubr.msk.f32.mxu0 %vm314_vm2, %v309_v14 }
  0x33   : > { %1755 = vmatmul.mubr.msk.f32.gmra.mrb[12].mxu0 %vm314_vm2, %v310_v15 }
  0x34   : > { %1757 = vmatprep.mubr.msk.f32.mxu0 %vm314_vm2, %v311_v16 }
  0x37   : > { %1758 = vmatmul.mubr.msk.f32.gmra.mrb[14].mxu0 %vm314_vm2, %v312_v17 }
  0x38   : > { %1762 = vmatprep.mubr.msk.f32.mxu0 %vm314_vm2, %v297_v2  ;;  %v2121_v2 = vrot.slane %v2079_v28, %v867_v51 }
  0x3b   : > { %1763 = vmatmul.mubr.msk.f32.vlgmr.msra.gmra.mrb[16].mxu0 %vm314_vm2, %v298_v3  ;;  %v2124_v3 = vrot.slane %v2079_v28, %v935_v52 }
  0x3c   : > { %1765 = vmatprep.mubr.msk.f32.mxu0 %vm314_vm2, %v299_v4 }
  0x3f   : > { %1766 = vmatmul.mubr.msk.f32.gmra.mrb[18].mxu0 %vm314_vm2, %v300_v6 }
  0x40   : > { %1768 = vmatprep.mubr.msk.f32.mxu0 %vm314_vm2, %v301_v7 }
  0x43   : > { %1769 = vmatmul.mubr.msk.f32.gmra.mrb[20].mxu0 %vm314_vm2, %v302_v8 }
  0x44   : > { %1771 = vmatprep.mubr.msk.f32.mxu0 %vm314_vm2, %v303_v9 }
  0x47   : > { %1772 = vmatmul.mubr.msk.f32.gmra.mrb[22].mxu0 %vm314_vm2, %v304_v10 }
  0xee   : > { %v1738_v29 = vpop.f32.mrb[0].mxu0 }
  0xef   : > { %v531_v30 = vrot.slane %v1738_v29, 7  ;;  %v2081_v31 = vpop.f32.mrb[1].mxu0 }
  0xf0   : > { %v530_v33 = vrot.slane %v2081_v31, 7 }
  0xf2   : > { %v561_v34 = vsel %vm546_vm3, %v530_v33, %v531_v30  ;;  %v1741_v35 = vpop.f32.mrb[2].mxu0 }
  0xf3   : > { %v600_v36 = vmul.f32 %v2085_v32, %v561_v34  ;;  %v533_v37 = vrot.slane %v1741_v35, 7  ;;  %v443_v38 = vpop.f32.mrb[3].mxu0 }
  0xf4   : > { %v532_v39 = vrot.slane %v443_v38, 7 }
  0xf5   : > { %v2093_v40 = vadd.f32 %v1738_v29, %v600_v36 }
  0xf6   : > { %v559_v42 = vsel %vm546_vm3, %v532_v39, %v533_v37  ;;  %v560_v43 = vsel %vm546_vm3, %v531_v30, %v532_v39  ;;  %v1744_v45 = vpop.f32.mrb[4].mxu0 }
  0xf7   : > { %v601_v46 = vmul.f32 %v2085_v32, %v560_v43  ;;  %v602_v47 = vmul.f32 %v2085_v32, %v559_v42  ;;  %v535_v48 = vrot.slane %v1744_v45, 7  ;;  %v453_v49 = vpop.f32.mrb[5].mxu0  ;;  %v632_v56 = vrot.slane %v2093_v40, 6 }
  0xf8   : > { %v534_v50 = vrot.slane %v453_v49, 7 }
  0xf9   : > { %v617_v53 = vadd.f32 %v601_v46, %v443_v38  ;;  %v618_v54 = vadd.f32 %v1741_v35, %v602_v47 }
  0xfa   : > { %v557_v58 = vsel %vm546_vm3, %v534_v50, %v535_v48  ;;  %v558_v59 = vsel %vm546_vm3, %v533_v37, %v534_v50  ;;  %v1747_v60 = vpop.f32.mrb[6].mxu0 }
  0xfb   : > { %v633_v61 = vrot.slane %v617_v53, 6  ;;  %v634_v62 = vrot.slane %v618_v54, 6  ;;  %v603_v63 = vmul.f32 %v2085_v32, %v558_v59  ;;  %v604_v0 = vmul.f32 %v2085_v32, %v557_v58  ;;  %v463_v1 = vpop.f32.mrb[7].mxu0 }
  0xfc   : > { %v537_v4 = vrot.slane %v1747_v60, 7  ;;  %v536_v5 = vrot.slane %v463_v1, 7 }
  0xfd   : > { %v660_v6 = vsel %vm647_vm4, %v633_v61, %v634_v62  ;;  %v661_v7 = vsel %vm647_vm4, %v632_v56, %v633_v61  ;;  %v619_v8 = vadd.f32 %v603_v63, %v453_v49  ;;  %v620_v9 = vadd.f32 %v1744_v45, %v604_v0 }
  0xfe   : > { %v702_v10 = vmul.f32 %v2107_v55, %v661_v7  ;;  %v703_v11 = vmul.f32 %v2107_v55, %v660_v6  ;;  %v555_v12 = vsel %vm546_vm3, %v536_v5, %v537_v4  ;;  %v556_v13 = vsel %vm546_vm3, %v535_v48, %v536_v5  ;;  %v2138_v14 = vpop.f32.mrb[8].mxu0 }
  0xff   : > { %v635_v15 = vrot.slane %v619_v8, 6  ;;  %v636_v16 = vrot.slane %v620_v9, 6  ;;  %v605_v17 = vmul.f32 %v2085_v32, %v556_v13  ;;  %v606_v18 = vmul.f32 %v2085_v32, %v555_v12  ;;  %v473_v19 = vpop.f32.mrb[9].mxu0 }
 0x100   : > { %v2142_v20 = vadd.f32 %v702_v10, %v617_v53  ;;  %v719_v21 = vadd.f32 %v703_v11, %v618_v54  ;;  %v539_v22 = vrot.slane %v2138_v14, 7  ;;  %v538_v23 = vrot.slane %v473_v19, 7 }
 0x101   : > { %v658_v24 = vsel %vm647_vm4, %v635_v15, %v636_v16  ;;  %v659_v25 = vsel %vm647_vm4, %v634_v62, %v635_v15  ;;  %v621_v27 = vadd.f32 %v605_v17, %v463_v1  ;;  %v622_v29 = vadd.f32 %v1747_v60, %v606_v18 }
 0x102   : > { %v734_v30 = vrot.slane %v2142_v20, 4  ;;  %v735_v34 = vrot.slane %v719_v21, 4  ;;  %v704_v35 = vmul.f32 %v2107_v55, %v659_v25  ;;  %v705_v36 = vmul.f32 %v2107_v55, %v658_v24  ;;  %v2152_v37 = vpop.f32.mrb[10].mxu0 }
 0x103   : > { %v637_v38 = vrot.slane %v621_v27, 6  ;;  %v638_v39 = vrot.slane %v622_v29, 6  ;;  %v553_v41 = vsel %vm546_vm3, %v538_v23, %v539_v22  ;;  %v554_v42 = vsel %vm546_vm3, %v537_v4, %v538_v23  ;;  %v2160_v43 = vpop.f32.mrb[11].mxu0 }
 0x104   : > { %v761_v44 = vsel %vm748_vm5, %v734_v30, %v735_v34  ;;  %v720_v45 = vadd.f32 %v704_v35, %v619_v8  ;;  %v721_v46 = vadd.f32 %v705_v36, %v620_v9  ;;  %v607_v47 = vmul.f32 %v2085_v32, %v554_v42 }
 0x105   : > { %v804_v48 = vmul.f32 %v2112_v57, %v761_v44  ;;  %v656_v49 = vsel %vm647_vm4, %v637_v38, %v638_v39  ;;  %v657_v50 = vsel %vm647_vm4, %v636_v16, %v637_v38  ;;  %v608_v51 = vmul.f32 %v2085_v32, %v553_v41 }
 0x106   : > { %v736_v52 = vrot.slane %v720_v45, 4  ;;  %v737_v53 = vrot.slane %v721_v46, 4  ;;  %v706_v54 = vmul.f32 %v2107_v55, %v657_v50  ;;  %v707_v58 = vmul.f32 %v2107_v55, %v656_v49  ;;  %v2175_v59 = vpop.f32.mrb[12].mxu0 }
 0x107   : > { %v2177_v60 = vadd.f32 %v804_v48, %v719_v21  ;;  %v1003_v61 = vsub.s32 5, %v2073_v26  ;;  %v623_v62 = vadd.f32 %v607_v47, %v473_v19  ;;  %v2181_v63 = vadd.f32 %v2138_v14, %v608_v51  ;;  %v2183_v0 = vpop.f32.mrb[13].mxu0 }
 0x108   : > { %v759_v1 = vsel %vm748_vm5, %v736_v52, %v737_v53  ;;  %v760_v4 = vsel %vm748_vm5, %v735_v34, %v736_v52  ;;  %v722_v5 = vadd.f32 %v706_v54, %v621_v27  ;;  %v723_v6 = vadd.f32 %v707_v58, %v622_v29 }
 0x109   : > { %v805_v7 = vmul.f32 %v2112_v57, %v760_v4  ;;  %v806_v8 = vmul.f32 %v2112_v57, %v759_v1  ;;  %v639_v9 = vrot.slane %v623_v62, 6  ;;  %v541_v10 = vrot.slane %v2152_v37, 7 }
 0x10a   : > { %v738_v11 = vrot.slane %v722_v5, 4  ;;  %v739_v12 = vrot.slane %v723_v6, 4  ;;  %v640_v13 = vrot.slane %v2181_v63, 6  ;;  %v540_v15 = vrot.slane %v2160_v43, 7  ;;  %v2194_v16 = vpop.f32.mrb[14].mxu0 }
 0x10b   : > { %v821_v17 = vadd.f32 %v805_v7, %v720_v45  ;;  %v822_v18 = vadd.f32 %v806_v8, %v721_v46  ;;  %v873_v19 = vmul.f32 %v2121_v2, %v2177_v60  ;;  %v655_v21 = vsel %vm647_vm4, %v638_v39, %v639_v9  ;;  %v2200_v23 = vpop.f32.mrb[15].mxu0 }
 0x10c   : > { %v757_v24 = vsel %vm748_vm5, %v738_v11, %v739_v12  ;;  %v758_v25 = vsel %vm748_vm5, %v737_v53, %v738_v11  ;;  %v654_v27 = vsel %vm647_vm4, %v639_v9, %v640_v13  ;;  %v708_v29 = vmul.f32 %v2107_v55, %v655_v21 }
 0x10d   : > { %v874_v34 = vmul.f32 %v2121_v2, %v821_v17  ;;  %v2210_v35 = vadd.f32 %v873_v19, %v821_v17  ;;  %v807_v36 = vmul.f32 %v2112_v57, %v758_v25  ;;  %v808_v38 = vmul.f32 %v2112_v57, %v757_v24 }
 0x10e   : > { %v2215_v39 = vrot.slane %v2079_v28, %v1003_v61  ;;  %v709_v41 = vmul.f32 %v2107_v55, %v654_v27  ;;  %v724_v42 = vadd.f32 %v708_v29, %v623_v62  ;;  %v551_v44 = vsel %vm546_vm3, %v540_v15, %v541_v10 }
 0x10f   : > { %v2220_v45 = vadd.f32 %v874_v34, %v822_v18  ;;  %v823_v46 = vadd.f32 %v807_v36, %v722_v5  ;;  %v824_v47 = vadd.f32 %v808_v38, %v723_v6  ;;  %v875_v48 = vmul.f32 %v2121_v2, %v822_v18 }
 0x110   : > { %v725_v49 = vadd.f32 %v709_v41, %v2181_v63  ;;  %v740_v50 = vrot.slane %v724_v42, 4  ;;  %v552_v51 = vsel %vm546_vm3, %v539_v22, %v540_v15  ;;  %v610_v52 = vmul.f32 %v2085_v32, %v551_v44 }
 0x111   : > { %v943_v53 = vmul.f32 %v2124_v3, %v2210_v35  ;;  %v876_v54 = vmul.f32 %v2121_v2, %v823_v46  ;;  %v891_v58 = vadd.f32 %v875_v48, %v823_v46  ;;  %v543_v61 = vrot.slane %v2175_v59, 7 }
 0x112   : > { %v741_v62 = vrot.slane %v725_v49, 4  ;;  %v756_v63 = vsel %vm748_vm5, %v739_v12, %v740_v50  ;;  %v609_v1 = vmul.f32 %v2085_v32, %v552_v51  ;;  %v626_v14 = vadd.f32 %v2152_v37, %v610_v52 }
 0x113   : > { %v944_v22 = vmul.f32 %v2124_v3, %v2220_v45  ;;  %v892_v4 = vadd.f32 %v876_v54, %v824_v47  ;;  %v2239_v5 = vadd.f32 %v943_v53, %v891_v58  ;;  %v809_v6 = vmul.f32 %v2112_v57, %v756_v63 }
 0x114   : > { %v755_v7 = vsel %vm748_vm5, %v740_v50, %v741_v62  ;;  %v625_v8 = vadd.f32 %v609_v1, %v2160_v43  ;;  %v642_v9 = vrot.slane %v626_v14, 6  ;;  %v542_v11 = vrot.slane %v2183_v0, 7 }
 0x115   : > { %v945_v12 = vmul.f32 %v2124_v3, %v891_v58  ;;  %v2247_v15 = vadd.f32 %v944_v22, %v892_v4  ;;  %v810_v37 = vmul.f32 %v2112_v57, %v755_v7  ;;  %v877_v17 = vmul.f32 %v2121_v2, %v824_v47 }
 0x116   : > { %v825_v18 = vadd.f32 %v809_v6, %v724_v42  ;;  %v641_v19 = vrot.slane %v625_v8, 6  ;;  %v549_v21 = vsel %vm546_vm3, %v542_v11, %v543_v61  ;;  %v550_v43 = vsel %vm546_vm3, %v541_v10, %v542_v11 }
 0x117   : > { %v826_v24 = vadd.f32 %v810_v37, %v725_v49  ;;  %v611_v25 = vmul.f32 %v2085_v32, %v550_v43  ;;  %v612_v27 = vmul.f32 %v2085_v32, %v549_v21  ;;  %v545_v29 = vrot.slane %v2194_v16, 7 }
 0x118   : > { %v878_v34 = vmul.f32 %v2121_v2, %v825_v18  ;;  %v893_v36 = vadd.f32 %v877_v17, %v825_v18  ;;  %v652_v38 = vsel %vm647_vm4, %v641_v19, %v642_v9  ;;  %v653_v41 = vsel %vm647_vm4, %v640_v13, %v641_v19 }
 0x119   : > { %v710_v42 = vmul.f32 %v2107_v55, %v653_v41  ;;  %v711_v10 = vmul.f32 %v2107_v55, %v652_v38  ;;  %v627_v44 = vadd.f32 %v611_v25, %v2183_v0  ;;  %v946_v46 = vmul.f32 %v2124_v3, %v892_v4 }
 0x11a   : > { %v894_v47 = vadd.f32 %v878_v34, %v826_v24  ;;  %v2270_v48 = vadd.f32 %v945_v12, %v893_v36  ;;  %v628_v49 = vadd.f32 %v2175_v59, %v612_v27  ;;  %v562_v13 = vsel %vm546_vm3, %v545_v29, %v530_v33 }
 0x11b   : > { %v726_v50 = vadd.f32 %v710_v42, %v625_v8  ;;  %v727_v51 = vadd.f32 %v711_v10, %v626_v14  ;;  %v643_v52 = vrot.slane %v627_v44, 6  ;;  %v579_v1 = vsel %vm563_vm6, %v562_v13, 0.0 }
 0x11c   : > { %v2277_v53 = vadd.f32 %v946_v46, %v894_v47  ;;  %v644_v0 = vrot.slane %v628_v49, 6  ;;  %v599_v4 = vmul.f32 %v2085_v32, %v579_v1  ;;  %v544_v6 = vrot.slane %v2200_v23, 7 }
 0x11d   : > { %v742_v54 = vrot.slane %v726_v50, 4  ;;  %v743_v58 = vrot.slane %v727_v51, 4  ;;  %v651_v63 = vsel %vm647_vm4, %v642_v9, %v643_v52  ;;  %v1015_v33 = vmul.f32 %v2215_v39, %v2239_v5 }
 0x11e   : > { %v650_v22 = vsel %vm647_vm4, %v643_v52, %v644_v0  ;;  %v712_v14 = vmul.f32 %v2107_v55, %v651_v63  ;;  %v615_v17 = vadd.f32 %v599_v4, %v2081_v31  ;;  %v879_v18 = vmul.f32 %v2121_v2, %v826_v24 }
 0x11f   : > { %v753_v7 = vsel %vm748_vm5, %v742_v54, %v743_v58  ;;  %v754_v8 = vsel %vm748_vm5, %v741_v62, %v742_v54  ;;  %v713_v9 = vmul.f32 %v2107_v55, %v650_v22  ;;  %v547_v21 = vsel %vm546_vm3, %v544_v6, %v545_v29 }
 0x120   : > { %v811_v11 = vmul.f32 %v2112_v57, %v754_v8  ;;  %v812_v12 = vmul.f32 %v2112_v57, %v753_v7  ;;  %v728_v37 = vadd.f32 %v712_v14, %v627_v44  ;;  %v548_v62 = vsel %vm546_vm3, %v543_v61, %v544_v6 }
 0x121   : > { %v2297_v19 = vadd.f32 %v713_v9, %v628_v49  ;;  %v631_v34 = vrot.slane %v615_v17, 6  ;;  %v947_v31 = vmul.f32 %v2124_v3, %v893_v36  ;;  %v613_v38 = vmul.f32 %v2085_v32, %v548_v62 }
 0x122   : > { %v827_v43 = vadd.f32 %v811_v11, %v726_v50  ;;  %v828_v25 = vadd.f32 %v812_v12, %v727_v51  ;;  %v744_v27 = vrot.slane %v728_v37, 4  ;;  %v614_v41 = vmul.f32 %v2085_v32, %v547_v21 }
 0x123   : > { %v745_v24 = vrot.slane %v2297_v19, 4  ;;  %v948_v29 = vmul.f32 %v2124_v3, %v894_v47  ;;  %v662_v36 = vsel %vm647_vm4, %v631_v34, %v632_v56  ;;  %v629_v32 = vadd.f32 %v613_v38, %v2200_v23 }
 0x124   : > { %v880_v59 = vmul.f32 %v2121_v2, %v827_v43  ;;  %v895_v42 = vadd.f32 %v879_v18, %v827_v43  ;;  %v752_v61 = vsel %vm748_vm5, %v743_v58, %v744_v27  ;;  %v881_v50 = vmul.f32 %v2121_v2, %v828_v25 }
 0x125   : > { %v751_v10 = vsel %vm748_vm5, %v744_v27, %v745_v24  ;;  %v813_v44 = vmul.f32 %v2112_v57, %v752_v61  ;;  %v701_v52 = vmul.f32 %v2107_v55, %v662_v36  ;;  %v630_v13 = vadd.f32 %v2194_v16, %v614_v41 }
 0x126   : > { %v896_v46 = vadd.f32 %v880_v59, %v828_v25  ;;  %v2322_v47 = vadd.f32 %v947_v31, %v895_v42  ;;  %v814_v49 = vmul.f32 %v2112_v57, %v751_v10  ;;  %v645_v54 = vrot.slane %v629_v32, 6 }
 0x127   : > { %v829_v51 = vadd.f32 %v813_v44, %v728_v37  ;;  %v949_v58 = vmul.f32 %v2124_v3, %v895_v42  ;;  %v1016_v23 = vmul.f32 %v2215_v39, %v2247_v15  ;;  %v717_v14 = vadd.f32 %v701_v52, %v2093_v40 }
 0x128   : > { %v2329_v63 = vadd.f32 %v948_v29, %v896_v46  ;;  %v830_v56 = vadd.f32 %v814_v49, %v2297_v19  ;;  %v646_v4 = vrot.slane %v630_v13, 6  ;;  %v649_v6 = vsel %vm647_vm4, %v644_v0, %v645_v54 }
 0x129   : > { %v882_v1 = vmul.f32 %v2121_v2, %v829_v51  ;;  %v897_v22 = vadd.f32 %v881_v50, %v829_v51  ;;  %v1071_v16 = vsub.s32 6, %v2073_v26  ;;  %v2340_v7 = vadd.f32 %v1015_v33, %v2322_v47 }
 0x12a   : > { %v2343_v8 = vadd.f32 %v1016_v23, %v2329_v63  ;;  %v950_v9 = vmul.f32 %v2124_v3, %v896_v46  ;;  %v733_v37 = vrot.slane %v717_v14, 4  ;;  %v1017_v40 = vmul.f32 %v2215_v39, %v2270_v48  ;;  %v2394_v23 = vld [vmem:[#allocation2] ss:$0 sm:$0xff] }
 0x12b   : > { %v898_v11 = vadd.f32 %v882_v1, %v830_v56  ;;  %v965_v12 = vadd.f32 %v949_v58, %v897_v22  ;;  %v648_v18 = vsel %vm647_vm4, %v645_v54, %v646_v4  ;;  %v663_v0 = vsel %vm647_vm4, %v646_v4, %v631_v34  ;;  %v1105_v58 = vld [vmem:[%s2581_s1] sm:$0xff] }
 0x12c   : > { %v714_v33 = vmul.f32 %v2107_v55, %v649_v6  ;;  %v680_v21 = vsel %vm664_vm7, %v663_v0, 0.0  ;;  %v715_v62 = vmul.f32 %v2107_v55, %v648_v18  ;;  %v1018_v43 = vmul.f32 %v2215_v39, %v2277_v53 }
 0x12d   : > { %v966_v19 = vadd.f32 %v950_v9, %v898_v11  ;;  %v700_v25 = vmul.f32 %v2107_v55, %v680_v21  ;;  %v762_v31 = vsel %vm748_vm5, %v733_v37, %v734_v30  ;;  %v2363_v34 = vadd.f32 %v1017_v40, %v965_v12 }
 0x12e   : > { %v730_v27 = vadd.f32 %v714_v33, %v629_v32  ;;  %v731_v38 = vadd.f32 %v715_v62, %v630_v13  ;;  %v803_v41 = vmul.f32 %v2112_v57, %v762_v31  ;;  %v869_v55 = vmul.f32 0.0, %v2121_v2 }
 0x12f   : > { %v2366_v29 = vadd.f32 %v1018_v43, %v966_v19  ;;  %v716_v59 = vadd.f32 %v700_v25, %v615_v17  ;;  %v937_v36 = vmul.f32 0.0, %v2124_v3  ;;  %v2375_v32 = vrot.slane %v2079_v28, %v1071_v16 }
 0x130   : > { %v746_v42 = vrot.slane %v730_v27, 4  ;;  %v747_v61 = vrot.slane %v731_v38, 4  ;;  %v819_v10 = vadd.f32 %v803_v41, %v2142_v20  ;;  %v2381_v49 = vmul.f32 0.0, %v2215_v39 }
 0x131   : > { %v732_v44 = vrot.slane %v716_v59, 4  ;;  %v883_v51 = vmul.f32 %v2121_v2, %v830_v56  ;;  %v951_v4 = vmul.f32 %v2124_v3, %v897_v22  ;;  %v2400_v26 = vmul.f32 0.0, %v2375_v32 }
 0x132   : > { %v750_v30 = vsel %vm748_vm5, %v745_v24, %v746_v42  ;;  %v749_v17 = vsel %vm748_vm5, %v746_v42, %v747_v61  ;;  %v872_v50 = vmul.f32 %v2121_v2, %v819_v10  ;;  %v1019_v40 = vmul.f32 %v2215_v39, %v2322_v47  ;;  %v1107_v47 = vld [vmem:[%s2581_s1 + $0x10] sm:$0xff] }
 0x133   : > { %v815_v46 = vmul.f32 %v2112_v57, %v750_v30  ;;  %v764_v20 = vsel %vm748_vm5, %v747_v61, %v732_v44  ;;  %v816_v24 = vmul.f32 %v2112_v57, %v749_v17  ;;  %v763_v28 = vsel %vm748_vm5, %v732_v44, %v733_v37 }
 0x134   : > { %v781_v52 = vsel %vm765_vm8, %v764_v20, 0.0  ;;  %v802_v54 = vmul.f32 %v2112_v57, %v763_v28  ;;  %v888_v1 = vadd.f32 %v872_v50, %v2177_v60  ;;  %v952_v18 = vmul.f32 %v2124_v3, %v898_v11 }
 0x135   : > { %v831_v13 = vadd.f32 %v815_v46, %v730_v27  ;;  %v832_v6 = vadd.f32 %v816_v24, %v731_v38  ;;  %v801_v56 = vmul.f32 %v2112_v57, %v781_v52  ;;  %v1128_v22 = vmul.f32 %v2394_v23, %v1105_v58  ;;  %v1106_v57 = vld [vmem:[%s2581_s1 + $0x8] sm:$0xff] }
 0x136   : > { %v818_v12 = vadd.f32 %v802_v54, %v717_v14  ;;  %v942_v37 = vmul.f32 %v2124_v3, %v888_v1  ;;  %v1020_v11 = vmul.f32 %v2215_v39, %v2329_v63  ;;  %v1109_v63 = vld [vmem:[%s2581_s1 + $0x20] sm:$0xff]  ;;  %v1130_v42 = vmul.f32 %v2394_v23, %v1107_v47 }
 0x137   : > { %v884_v16 = vmul.f32 %v2121_v2, %v831_v13  ;;  %v899_v9 = vadd.f32 %v883_v51, %v831_v13  ;;  %v817_v60 = vadd.f32 %v801_v56, %v716_v59  ;;  %v1108_v59 = vld [vmem:[%s2581_s1 + $0x18] sm:$0xff]  ;;  %v1132_v51 = vmul.f32 %v2394_v23, %v1109_v63 }
 0x138   : > { %v871_v19 = vmul.f32 %v2121_v2, %v818_v12  ;;  %v958_v14 = vadd.f32 %v942_v37, %v2220_v45  ;;  %v1129_v45 = vmul.f32 %v2394_v23, %v1106_v57  ;;  %v1131_v50 = vmul.f32 %v2394_v23, %v1108_v59  ;;  %v1111_v37 = vld [vmem:[%s2581_s1 + $0x30] sm:$0xff] }
 0x139   : > { %v900_v0 = vadd.f32 %v884_v16, %v832_v6  ;;  %v967_v33 = vadd.f32 %v951_v4, %v899_v9  ;;  %v870_v21 = vmul.f32 %v2121_v2, %v817_v60  ;;  %v885_v62 = vadd.f32 %v869_v55, %v817_v60  ;;  %v1110_v16 = vld [vmem:[%s2581_s1 + $0x28] sm:$0xff] }
 0x13a   : > { %v887_v25 = vadd.f32 %v871_v19, %v819_v10  ;;  %v1014_v27 = vmul.f32 %v2215_v39, %v958_v14 }
 0x13b   : > { %v968_v43 = vadd.f32 %v952_v18, %v900_v0  ;;  %v2420_v31 = vadd.f32 %v1019_v40, %v967_v33  ;;  %v886_v38 = vadd.f32 %v870_v21, %v818_v12  ;;  %v953_v41 = vadd.f32 %v937_v36, %v885_v62 }
 0x13c   : > { %v939_v2 = vmul.f32 %v2124_v3, %v885_v62  ;;  %v941_v61 = vmul.f32 %v2124_v3, %v887_v25  ;;  %v1030_v55 = vadd.f32 %v1014_v27, %v2277_v53  ;;  %v1133_v0 = vmul.f32 %v2394_v23, %v1110_v16  ;;  %v1764_v16 = vpop.f32.mrb[16].mxu0 }
 0x13d   : > { %v2433_v10 = vadd.f32 %v1020_v11, %v968_v43  ;;  %v954_v44 = vadd.f32 %v937_v36, %v886_v38  ;;  %v1021_v30 = vadd.f32 %v2381_v49, %v953_v41  ;;  %v940_v46 = vmul.f32 %v2124_v3, %v886_v38  ;;  %v1112_v38 = vld [vmem:[%s2581_s1 + $0x38] sm:$0xff] }
 0x13e   : > { %v955_v17 = vadd.f32 %v939_v2, %v887_v25  ;;  %v957_v20 = vadd.f32 %v941_v61, %v2210_v35  ;;  %v1009_v24 = vmul.f32 %v2215_v39, %v953_v41  ;;  %v1120_v25 = vld [vmem:[%s2581_s1 + $0x78] sm:$0xff] }
 0x13f   : > { %v1022_v28 = vadd.f32 %v2381_v49, %v954_v44  ;;  %v1089_v53 = vadd.f32 %v2400_v26, %v1021_v30  ;;  %v956_v36 = vadd.f32 %v940_v46, %v888_v1  ;;  %v1010_v54 = vmul.f32 %v2215_v39, %v954_v44 }
 0x140   : > { %v1023_v52 = vadd.f32 %v2381_v49, %v955_v17  ;;  %v1025_v13 = vadd.f32 %v1009_v24, %v957_v20  ;;  %v1011_v3 = vmul.f32 %v2215_v39, %v955_v17  ;;  %v1013_v58 = vmul.f32 %v2215_v39, %v957_v20 }
 0x141   : > { %v1144_v4 = vadd.f32 %v1128_v22, %v1089_v53  ;;  %v1090_v35 = vadd.f32 %v2400_v26, %v1022_v28  ;;  %v1024_v56 = vadd.f32 %v2381_v49, %v956_v36  ;;  %v1026_v9 = vadd.f32 %v1010_v54, %v958_v14  ;;  %v1119_v54 = vld [vmem:[%s2581_s1 + $0x70] sm:$0xff] }
 0x142   : > { %v1091_v6 = vadd.f32 %v2400_v26, %v1023_v52  ;;  %v1093_v1 = vadd.f32 %v2400_v26, %v1025_v13  ;;  %v1027_v12 = vadd.f32 %v1011_v3, %v2239_v5  ;;  %v1012_v40 = vmul.f32 %v2215_v39, %v956_v36 }
 0x143   : > { %1794 = vmatprep.mubr.msk.f32.mxu1 %vm1315_vm9, %v1144_v4  ;;  %v1145_v18 = vadd.f32 %v1129_v45, %v1090_v35  ;;  %v1092_v49 = vadd.f32 %v2400_v26, %v1024_v56  ;;  %v1029_v22 = vadd.f32 %v1013_v58, %v2270_v48  ;;  %v1134_v5 = vmul.f32 %v2394_v23, %v1111_v37 }
 0x144   : > { %v1146_v60 = vadd.f32 %v1130_v42, %v1091_v6  ;;  %v1028_v33 = vadd.f32 %v1012_v40, %v2247_v15  ;;  %v1081_v57 = vmul.f32 %v2375_v32, %v1021_v30  ;;  %v1082_v39 = vmul.f32 %v2375_v32, %v1022_v28 }
 0x145   : > { %1795 = vmatmul.mubr.msk.f32.vlgmr.msra.gmra.mrb[8].mxu1 %vm1315_vm9, %v1145_v18  ;;  %v1083_v19 = vmul.f32 %v2375_v32, %v1023_v52  ;;  %v1147_v14 = vadd.f32 %v1131_v50, %v1092_v49  ;;  %v1148_v21 = vadd.f32 %v1132_v51, %v1093_v1  ;;  %v1094_v48 = vadd.f32 %v2400_v26, %v1026_v9  ;;  %v1117_v51 = vld [vmem:[%s2581_s1 + $0x60] sm:$0xff]  ;;  %v1236_v1 = vpop.f32.mrb[17].mxu0 }
 0x146   : > { %1797 = vmatprep.mubr.msk.f32.mxu1 %vm1315_vm9, %v1146_v60  ;;  %v1084_v62 = vmul.f32 %v2375_v32, %v1024_v56  ;;  %v1097_v47 = vadd.f32 %v1081_v57, %v1029_v22  ;;  %v1098_v15 = vadd.f32 %v1082_v39, %v1030_v55  ;;  %v1085_v43 = vmul.f32 %v2375_v32, %v1025_v13  ;;  %v1118_v13 = vld [vmem:[%s2581_s1 + $0x68] sm:$0xff] }
 0x147   : > { %v1099_v11 = vadd.f32 %v1083_v19, %v2340_v7  ;;  %v1095_v27 = vadd.f32 %v2400_v26, %v1027_v12  ;;  %v1086_v45 = vmul.f32 %v2375_v32, %v1026_v9  ;;  %v1087_v2 = vmul.f32 %v2375_v32, %v1027_v12  ;;  %v1113_v7 = vld [vmem:[%s2581_s1 + $0x40] sm:$0xff]  ;;  %v1767_v9 = vpop.f32.mrb[18].mxu0 }
 0x148   : > { %v1100_v41 = vadd.f32 %v1084_v62, %v2343_v8  ;;  %v1101_v59 = vadd.f32 %v1085_v43, %v2363_v34  ;;  %v1088_v8 = vmul.f32 %v2375_v32, %v1028_v33  ;;  %v1143_v61 = vmul.f32 %v2394_v23, %v1120_v25  ;;  %v1114_v34 = vld [vmem:[%s2581_s1 + $0x48] sm:$0xff]  ;;  %v1115_v32 = vld [vmem:[%s2581_s1 + $0x50] sm:$0xff]  ;;  %v1246_v12 = vpop.f32.mrb[19].mxu0 }
 0x149   : > { %1798 = vmatmul.mubr.msk.f32.gmra.mrb[10].mxu1 %vm1315_vm9, %v1147_v14  ;;  %v1102_v63 = vadd.f32 %v1086_v45, %v2366_v29  ;;  %v1103_v42 = vadd.f32 %v1087_v2, %v2420_v31  ;;  %v1149_v55 = vadd.f32 %v1133_v0, %v1094_v48  ;;  %v1096_v44 = vadd.f32 %v2400_v26, %v1028_v33 }
 0x14a   : > { %1800 = vmatprep.mubr.msk.f32.mxu1 %vm1315_vm9, %v1148_v21  ;;  %v1135_v30 = vmul.f32 %v2394_v23, %v1112_v38  ;;  %v1150_v17 = vadd.f32 %v1134_v5, %v1095_v27  ;;  %v1136_v46 = vmul.f32 %v2394_v23, %v1113_v7  ;;  %v1104_v29 = vadd.f32 %v1088_v8, %v2433_v10  ;;  %v1116_v10 = vld [vmem:[%s2581_s1 + $0x58] sm:$0xff] }
 0x14b   : > { %v1137_v50 = vmul.f32 %v2394_v23, %v1114_v34  ;;  %v1138_v24 = vmul.f32 %v2394_v23, %v1115_v32  ;;  %v1139_v53 = vmul.f32 %v2394_v23, %v1116_v10  ;;  %v1140_v36 = vmul.f32 %v2394_v23, %v1117_v51 }
 0x14c   : > { %v1159_v26 = vadd.f32 %v1143_v61, %v1104_v29  ;;  %v1151_v31 = vadd.f32 %v1135_v30, %v1096_v44  ;;  %v1152_v20 = vadd.f32 %v1136_v46, %v1097_v47  ;;  %v1141_v58 = vmul.f32 %v2394_v23, %v1118_v13 }
 0x14d   : > { %1801 = vmatmul.mubr.msk.f32.gmra.mrb[12].mxu1 %vm1315_vm9, %v1149_v55  ;;  %v1153_v28 = vadd.f32 %v1137_v50, %v1098_v15  ;;  %v1154_v52 = vadd.f32 %v1138_v24, %v1099_v11  ;;  %v1155_v3 = vadd.f32 %v1139_v53, %v1100_v41  ;;  %v1156_v4 = vadd.f32 %v1140_v36, %v1101_v59 }
 0x14e   : > { %1803 = vmatprep.mubr.msk.f32.mxu1 %vm1315_vm9, %v1150_v17  ;;  %1161 = vst.msk [vmem:[#allocation2 - $0x7] sm:$0x80] %vm1160_vm10, %v1159_v26  ;;  %v1142_v35 = vmul.f32 %v2394_v23, %v1119_v54  ;;  %v1157_v6 = vadd.f32 %v1141_v58, %v1102_v63  ;;  %v1770_v23 = vpop.f32.mrb[20].mxu0 }
 0x14f   : > { %v1256_v37 = vpop.f32.mrb[21].mxu0 }
 0x150   : > { %v1158_v56 = vadd.f32 %v1142_v35, %v1103_v42  ;;  %v1773_v40 = vpop.f32.mrb[22].mxu0 }
 0x151   : > { %1804 = vmatmul.mubr.msk.f32.gmra.mrb[14].mxu1 %vm1315_vm9, %v1151_v31  ;;  %v1266_v18 = vpop.f32.mrb[23].mxu0 }
 0x152   : > { %1806 = vmatprep.mubr.msk.f32.mxu1 %vm1315_vm9, %v1152_v20 }
 0x155   : > { %1807 = vmatmul.mubr.msk.f32.gmra.mrb[0].mxu1 %vm1315_vm9, %v1153_v28 }
 0x156   : > { %1809 = vmatprep.mubr.msk.f32.mxu1 %vm1315_vm9, %v1154_v52 }
 0x159   : > { %1810 = vmatmul.mubr.msk.f32.gmra.mrb[2].mxu1 %vm1315_vm9, %v1155_v3 }
 0x15a   : > { %1812 = vmatprep.mubr.msk.f32.mxu1 %vm1315_vm9, %v1156_v4 }
 0x15d   : > { %1813 = vmatmul.mubr.msk.f32.gmra.mrb[4].mxu1 %vm1315_vm9, %v1157_v6 }
 0x15e   : > { %1815 = vmatprep.mubr.msk.f32.mxu1 %vm1315_vm9, %v1158_v56 }
 0x161   : > { %1816 = vmatmul.mubr.msk.f32.gmra.mrb[6].mxu1 %vm1315_vm9, %v1159_v26 }
 0x218   : > { %v1796_v60 = vpop.f32.mrb[8].mxu1 }
 0x219   : > { %v1436_v49 = vadd.f32 %v1796_v60, %v1764_v16  ;;  %v1430_v22 = vpop.f32.mrb[9].mxu1 }
 0x21a   : > { %v1431_v0 = vadd.f32 %v1430_v22, %v1236_v1 }
 0x21b   : > { %1510 = vst.msk [vmem:[%s1999_s13 + $0x8] sm:$0xff] %vm314_vm2, %v1436_v49 }
 0x21c   : > { %1509 = vst.msk [vmem:[%s1999_s13] sm:$0xff] %vm314_vm2, %v1431_v0  ;;  %v1799_v33 = vpop.f32.mrb[10].mxu1 }
 0x21d   : > { %v1446_v5 = vadd.f32 %v1799_v33, %v1767_v9  ;;  %v1440_v57 = vpop.f32.mrb[11].mxu1 }
 0x21e   : > { %v1441_v39 = vadd.f32 %v1440_v57, %v1246_v12 }
 0x21f   : > { %1512 = vst.msk [vmem:[%s1999_s13 + $0x18] sm:$0xff] %vm314_vm2, %v1446_v5 }
 0x220   : > { %1511 = vst.msk [vmem:[%s1999_s13 + $0x10] sm:$0xff] %vm314_vm2, %v1441_v39  ;;  %v1802_v19 = vpop.f32.mrb[12].mxu1 }
 0x221   : > { %v1456_v14 = vadd.f32 %v1802_v19, %v1770_v23  ;;  %v1450_v21 = vpop.f32.mrb[13].mxu1 }
 0x222   : > { %v1451_v48 = vadd.f32 %v1450_v21, %v1256_v37 }
 0x223   : > { %1514 = vst.msk [vmem:[%s1999_s13 + $0x28] sm:$0xff] %vm314_vm2, %v1456_v14 }
 0x224   : > { %1513 = vst.msk [vmem:[%s1999_s13 + $0x20] sm:$0xff] %vm314_vm2, %v1451_v48  ;;  %v1805_v62 = vpop.f32.mrb[14].mxu1 }
 0x225   : > { %v1466_v47 = vadd.f32 %v1805_v62, %v1773_v40  ;;  %v1460_v15 = vpop.f32.mrb[15].mxu1 }
 0x226   : > { %v1461_v11 = vadd.f32 %v1460_v15, %v1266_v18 }
 0x227   : > { %1516 = vst.msk [vmem:[%s1999_s13 + $0x38] sm:$0xff] %vm314_vm2, %v1466_v47 }
 0x228   : > { %1515 = vst.msk [vmem:[%s1999_s13 + $0x30] sm:$0xff] %vm314_vm2, %v1461_v11  ;;  %v1808_v43 = vpop.f32.mrb[0].mxu1 }
 0x229   : > { %1518 = vst.msk [vmem:[%s1999_s13 + $0x48] sm:$0xff] %vm314_vm2, %v1808_v43  ;;  %v1470_v25 = vpop.f32.mrb[1].mxu1 }
 0x22a   : > { %1517 = vst.msk [vmem:[%s1999_s13 + $0x40] sm:$0xff] %vm314_vm2, %v1470_v25 }
 0x22c   : > { %v1811_v27 = vpop.f32.mrb[2].mxu1 }
 0x22d   : > { %1520 = vst.msk [vmem:[%s1999_s13 + $0x58] sm:$0xff] %vm314_vm2, %v1811_v27  ;;  %v1480_v38 = vpop.f32.mrb[3].mxu1 }
 0x22e   : > { %1519 = vst.msk [vmem:[%s1999_s13 + $0x50] sm:$0xff] %vm314_vm2, %v1480_v38 }
 0x230   : > { %v1814_v41 = vpop.f32.mrb[4].mxu1 }
 0x231   : > { %1522 = vst.msk [vmem:[%s1999_s13 + $0x68] sm:$0xff] %vm314_vm2, %v1814_v41  ;;  %v1490_v45 = vpop.f32.mrb[5].mxu1 }
 0x232   : > { %1521 = vst.msk [vmem:[%s1999_s13 + $0x60] sm:$0xff] %vm314_vm2, %v1490_v45 }
 0x234   : > { %v1817_v2 = vpop.f32.mrb[6].mxu1 }
 0x235   : > { %1524 = vst.msk [vmem:[%s1999_s13 + $0x78] sm:$0xff] %vm314_vm2, %v1817_v2  ;;  %v1500_v7 = vpop.f32.mrb[7].mxu1 }
 0x236   : > { %1523 = vst.msk [vmem:[%s1999_s13 + $0x70] sm:$0xff] %vm314_vm2, %v1500_v7 }
 0x237 PF: > { %s16_s25 = sadd.s32 1, %s1923_s25   ;;  %s2587_s21 = smov %s1915_s23 }
 0x238   : > { %p13_p8 = scmp.ge.s32.totalorder %s16_s25, 6   ;;  %s2588_s22 = smov %s1919_s24 }
 0x239   : > { %s2589_s23 = smov %s2592_s26  ;;  %s2590_s24 = smov %s2596_s27 }
 0x23a   :  { %15 = sbr.rel (!%p13_p8) target bundleno = 3 (0x3), region = 78 }

</bundles_post_ra>
